<compile_context>
chip_gen: v7x
topology: tpu7x:2x2x1
jax: 0.10.0
libtpu: 0.0.40
codegen_flags: <defaults>
</compile_context>

<pallas_src>
import math
import jax
import jax.numpy as jnp
from jax.experimental import pallas as pl
from jax.experimental.pallas import tpu as pltpu

_LANE = 128
_MEGACORE_SPLIT_BYTES = 256 * 1024  # only force >=2 blocks above this size


def _build_positional_encoding(d_model: int, max_len: int = 100) -> jnp.ndarray:
    """Deterministic pe buffer matching the PyTorch module (odd d_model safe)."""
    position = jnp.arange(max_len, dtype=jnp.float32)[:, None]            # (L, 1)
    div_term = jnp.exp(
        jnp.arange(0, d_model, 2, dtype=jnp.float32) * (-math.log(10000.0) / d_model)
    )                                                                      # (ceil(D/2),)
    angles = position * div_term                                           # (L, ceil(D/2))
    pe = jnp.zeros((max_len, d_model), dtype=jnp.float32)
    pe = pe.at[:, 0::2].set(jnp.sin(angles))
    pe = pe.at[:, 1::2].set(jnp.cos(angles[:, : d_model // 2]))
    return pe


def _pe_add_kernel(x_ref, pe_ref, o_ref):
    # x_ref/o_ref: (nb, tp, 128) in x.dtype; pe_ref: (1, tp, 128) f32, resident
    # across the inner (batch) grid axis. Leading-dim broadcast of pe is a few
    # VALU ops of pure slack in this memory-bound kernel. Add in f32, store in
    # the activation dtype (matches PyTorch promotion against the f32 buffer).
    o_ref[...] = (x_ref[...].astype(jnp.float32) + pe_ref[...]).astype(o_ref.dtype)


def _vmem_capacity_bytes() -> int:
    try:
        return int(pltpu.get_tpu_info().vmem_capacity_bytes)
    except Exception:
        return 64 * 1024 * 1024  # conservative fallback (v7x per-TC VMEM)


def positional_encoding_forward(x: jnp.ndarray, pe: jnp.ndarray, *, donate_x: bool = False) -> jnp.ndarray:
    """x: (B, S, D); pe: (max_len, D). Returns x + pe[None, :S, :] in x.dtype."""
    if x.ndim != 3:
        raise ValueError(f"expected x of shape (batch, seq, d_model), got {x.shape}")
    B, S, D = x.shape
    max_len, d_model = pe.shape
    if D != d_model:
        raise ValueError(f"d_model mismatch: x has {D}, pe has {d_model}")
    if S > max_len:
        raise ValueError(f"seq_len {S} exceeds max_len {max_len}")

    pe_s = pe[:S, :].astype(jnp.float32)   # keep f32: add is done in f32 in-kernel
    itemsize = jnp.dtype(x.dtype).itemsize

    # ---- lane-dense (P, 128) view; pad D to a multiple of 128 if needed ----
    if (S * D) % _LANE == 0:
        Dp = D
        x_w, pe_w = x, pe_s
    else:
        Dp = ((D + _LANE - 1) // _LANE) * _LANE
        x_w = jnp.pad(x, ((0, 0), (0, 0), (0, Dp - D)))
        pe_w = jnp.pad(pe_s, ((0, 0), (0, Dp - D)))
    P = (S * Dp) // _LANE
    W = _LANE
    x_v = x_w.reshape(B, P, W)
    pe_v = pe_w.reshape(1, P, W)

    # ---- generation-aware block sizing ----
    vmem_cap = _vmem_capacity_bytes()
    target_block_bytes = max(512 * 1024, vmem_cap // 16)          # ~8 MiB (v5e/v6e), ~4 MiB (v7x)
    vmem_limit = int(min(vmem_cap - 8 * 1024 * 1024, (vmem_cap * 3) // 4))

    row_align = 8 * max(1, 4 // itemsize)    # 8 for f32, 16 for bf16, 32 for int8/fp8
    row_bytes = W * itemsize

    max_rows = max(1, target_block_bytes // row_bytes)
    if P <= max_rows:
        tp = P
        nb = int(max(1, min(B, target_block_bytes // max(1, P * row_bytes))))
    else:
        tp = min(P, max(row_align, (max_rows // row_align) * row_align))
        nb = 1

    # ---- keep >= 2 parallel blocks on non-tiny inputs (v7x: 2 TensorCores) ----
    total_bytes = B * P * W * itemsize
    if pl.cdiv(P, tp) * pl.cdiv(B, nb) < 2 and total_bytes >= _MEGACORE_SPLIT_BYTES:
        if B >= 2:
            nb = (B + 1) // 2
        else:
            tp_half = ((P // 2 + row_align - 1) // row_align) * row_align
            if 0 < tp_half < P:
                tp = tp_half

    # Batch axis innermost -> pe's block index is constant across the inner
    # loop, so it is fetched once per row block and stays resident in VMEM.
    grid = (pl.cdiv(P, tp), pl.cdiv(B, nb))

    out = pl.pallas_call(
        _pe_add_kernel,
        out_shape=jax.ShapeDtypeStruct((B, P, W), x.dtype),
        grid_spec=pltpu.PrefetchScalarGridSpec(
            num_scalar_prefetch=0,
            grid=grid,
            in_specs=[
                pl.BlockSpec((nb, tp, W), lambda r, b: (b, r, 0)),
                pl.BlockSpec((1, tp, W), lambda r, b: (0, r, 0)),  # resident across batch loop
            ],
            out_specs=pl.BlockSpec((nb, tp, W), lambda r, b: (b, r, 0)),
        ),
        compiler_params=pltpu.CompilerParams(
            dimension_semantics=("parallel", "parallel"),
            vmem_limit_bytes=vmem_limit,
        ),
        input_output_aliases=({0: 0} if donate_x else {}),
    )(x_v, pe_v)

    out = out.reshape(B, S, Dp)
    if Dp != D:
        out = out[:, :, :D]
    return out


if __name__ == "__main__":
    # Small shapes consistent with the module: batch=2, seq=8, d_model=32.
    B, S, D = 2, 8, 32
    MAX_LEN = 100

    key = jax.random.PRNGKey(0)
    x = jax.random.normal(key, (B, S, D), dtype=jnp.float32)
    pe = _build_positional_encoding(D, MAX_LEN)

    out = jax.block_until_ready(positional_encoding_forward(x, pe))
    ref = x + pe[None, :S, :]
    assert out.shape == (B, S, D)
    assert jnp.allclose(out, ref, atol=1e-6), "mismatch vs reference (small f32)"

    # bf16 activations: add is done against the f32 pe buffer, stored as bf16.
    x_bf = x.astype(jnp.bfloat16)
    out_bf = jax.block_until_ready(positional_encoding_forward(x_bf, pe))
    ref_bf = (x_bf.astype(jnp.float32) + pe[None, :S, :]).astype(jnp.bfloat16)
    assert jnp.allclose(out_bf.astype(jnp.float32), ref_bf.astype(jnp.float32), atol=1e-2), \
        "mismatch vs reference (bf16)"

    # d_model not lane-friendly (S*D % 128 != 0) -> exercises the padded path.
    B2, S2, D2 = 4, 16, 100
    x2 = jax.random.normal(jax.random.PRNGKey(0), (B2, S2, D2), dtype=jnp.float32)
    pe2 = _build_positional_encoding(D2, MAX_LEN)
    out2 = jax.block_until_ready(positional_encoding_forward(x2, pe2))
    ref2 = x2 + pe2[None, :S2, :]
    assert out2.shape == (B2, S2, D2)
    assert jnp.allclose(out2, ref2, atol=1e-6), "mismatch vs reference (padded D)"

    # Larger shape exercising multi-block batch tiling + the >=2-block split.
    B3, S3, D3 = 32, 128, 256
    x3 = jax.random.normal(jax.random.PRNGKey(0), (B3, S3, D3), dtype=jnp.float32)
    pe3 = _build_positional_encoding(D3, max_len=256)
    out3 = jax.block_until_ready(positional_encoding_forward(x3, pe3))
    ref3 = x3 + pe3[None, :S3, :]
    assert jnp.allclose(out3, ref3, atol=1e-5), "mismatch vs reference (large)"

    print("KERNEL_OK")
</pallas_src>

<mosaic_0001>
module attributes {stable_mosaic.version = 11 : i64} {
  func.func @_pe_add_kernel(%arg0: i32, %arg1: i32, %arg2: memref<2x2x128xf32, #tpu.memory_space<vmem>>, %arg3: memref<1x2x128xf32, #tpu.memory_space<vmem>>, %arg4: memref<2x2x128xf32, #tpu.memory_space<vmem>>) attributes {dimension_semantics = [#tpu.dimension_semantics<parallel>, #tpu.dimension_semantics<parallel>], iteration_bounds = array<i64: 1, 1>, scalar_prefetch = 0 : i64, scratch_operands = 0 : i64, tpu.core_type = #tpu.core_type<tc>, window_params = [{transform_indices = @transform_0, window_bounds = array<i64: 2, 2, 128>}, {transform_indices = @transform_1, window_bounds = array<i64: 1, 2, 128>}, {transform_indices = @transform_2, window_bounds = array<i64: 2, 2, 128>}]} {
    %c0 = arith.constant 0 : index
    %c0_0 = arith.constant 0 : index
    %c0_1 = arith.constant 0 : index
    %0 = vector.load %arg2[%c0, %c0_0, %c0_1] : memref<2x2x128xf32, #tpu.memory_space<vmem>>, vector<2x2x128xf32>
    %c0_2 = arith.constant 0 : index
    %c0_3 = arith.constant 0 : index
    %c0_4 = arith.constant 0 : index
    %1 = vector.load %arg3[%c0_2, %c0_3, %c0_4] : memref<1x2x128xf32, #tpu.memory_space<vmem>>, vector<1x2x128xf32>
    %2 = vector.broadcast %1 : vector<1x2x128xf32> to vector<2x2x128xf32>
    %3 = arith.addf %0, %2 : vector<2x2x128xf32>
    %c0_5 = arith.constant 0 : index
    %c0_6 = arith.constant 0 : index
    %c0_7 = arith.constant 0 : index
    %4 = vector.load %arg4[%c0_5, %c0_6, %c0_7] : memref<2x2x128xf32, #tpu.memory_space<vmem>>, vector<2x2x128xf32>
    tpu.vector_store %arg4[%c0_5, %c0_6, %c0_7], %3 {strides = array<i32>} : memref<2x2x128xf32, #tpu.memory_space<vmem>>, vector<2x2x128xf32>,
    return
  }
  func.func @transform_0(%arg0: i32, %arg1: i32) -> (i32, i32, i32) {
    %c0_i32 = arith.constant 0 : i32
    %c0_i32_0 = arith.constant 0 : i32
    return %arg1, %arg0, %c0_i32 : i32, i32, i32
  }
  func.func @transform_1(%arg0: i32, %arg1: i32) -> (i32, i32, i32) {
    %c0_i32 = arith.constant 0 : i32
    %c0_i32_0 = arith.constant 0 : i32
    %c0_i32_1 = arith.constant 0 : i32
    return %c0_i32, %arg0, %c0_i32_0 : i32, i32, i32
  }
  func.func @transform_2(%arg0: i32, %arg1: i32) -> (i32, i32, i32) {
    %c0_i32 = arith.constant 0 : i32
    %c0_i32_0 = arith.constant 0 : i32
    return %arg1, %arg0, %c0_i32 : i32, i32, i32
  }
}

</mosaic_0001>

<bundles_post_ra>
// kernel: tpu_custom_call.1
= control target key start
LH: loop header
LB: loop body
LE: loop exit
PB: predicated region body
PF: predicated region fallthrough
CT: control target
= control target key end

     0   :  { %7 = vsyncpa [#allocation3], 0  ;;  %s154_s0 = inlined_call_operand.hbm [shape: f32[2,2,128], index: 0, kind: input, shape index: {}]   ;;  %s155_s1 = inlined_call_operand.vmem [shape: f32[1,2,128], index: 1, kind: input, shape index: {}]   ;;  %s156_s2 = inlined_call_operand.hbm [shape: f32[2,2,128], index: 2, kind: output, shape index: {}]  }
   0x1   :  { %8 = vsyncpa [#allocation4], 0  ;;  %s102_s9 = smov [#allocation2]   ;;  %s54_s13 = scalar_lea.hbm %s154_s0, 64 }
   0x2   :  { %s14_s10 = sshll.u32 %s102_s9, 4  ;;  %p55_p0 = scmp.ne.s32.totalorder %s154_s0, %s54_s13  ;;  %s15_s10 = int_to_ptr.vmem [resolvable:$true] %s14_s10 }
   0x3   :  { %p58_p1 = scmp.lt.u32.totalorder %s54_s13, %s154_s0 }
   0x5   :  { %p60_p2 = pnand %p58_p1, %p55_p0 }
   0x7   :  { %63 = shalt.err (!%p60_p2)
}
   0x8   :  { %s64_s18 = scalar_lea.vmem %s15_s10, 64  ;;  %p69_p4 = scmp.lt.s32.totalorder %s15_s10, %s15_s10 }
   0x9   :  { %p65_p3 = scmp.ne.s32.totalorder %s15_s10, %s64_s18  ;;  %p70_p5 = scmp.lt.s32.totalorder %s64_s18, %s64_s18 }
   0xb   :  { %p71_p6 = por %p70_p5, %p69_p4 }
   0xd   :  { %p72_p7 = pnand %p71_p6, %p65_p3 }
   0xf   :  { %75 = shalt.err (!%p72_p7)
}
  0x10   :  { %s103_s19 = smov 32   ;;  %s104_s20 = smov 2  }
  0x11   :  { %20 = dma.hbm_to_vmem [thread:$0]  %s154_s0, 64, %s15_s10, [#allocation3], %s103_s19, %s103_s19, %s104_s20  }
  0x12   :  { %98 = dma.done.wait [#allocation3], 64  }
  0x13   :  { %99 = vsyncadd [#allocation3], 4294967232  ;;  %s105_s23 = smov [#allocation5]   ;;  %v26_v0 = vld [vmem:[#allocation2] sm:$0x3] }
  0x14   :  { %s38_s24 = sshll.u32 %s105_s23, 4  ;;  %v28_v1 = vld [vmem:[%s155_s1] sm:$0x3]  ;;  %v27_v2 = vld [vmem:[#allocation2 + $0x2] sm:$0x3]  ;;  %s39_s24 = int_to_ptr.vmem [resolvable:$true] %s38_s24 }
  0x15   :  { %v29_v3 = vadd.f32 %v28_v1, %v26_v0  ;;  %v30_v4 = vadd.f32 %v28_v1, %v27_v2  ;;  %s76_s27 = scalar_lea.vmem %s39_s24, 64  ;;  %p81_p9 = scmp.lt.s32.totalorder %s39_s24, %s39_s24 }
  0x16   :  { %p77_p8 = scmp.ne.s32.totalorder %s39_s24, %s76_s27  ;;  %p82_p10 = scmp.lt.s32.totalorder %s76_s27, %s76_s27 }
  0x17   :  { %31 = vst [vmem:[#allocation5] sm:$0x3] %v29_v3  ;;  %32 = vst [vmem:[#allocation5 + $0x2] sm:$0x3] %v30_v4 }
  0x18   :  { %p83_p11 = por %p82_p10, %p81_p9 }
  0x1a   :  { %p84_p12 = pnand %p83_p11, %p77_p8 }
  0x1c   :  { %87 = shalt.err (!%p84_p12)
}
  0x1d   :  { %s88_s29 = scalar_lea.hbm %s156_s2, 64 }
  0x1e   :  { %p89_p13 = scmp.ne.s32.totalorder %s156_s2, %s88_s29  ;;  %p92_p0 = scmp.lt.u32.totalorder %s88_s29, %s156_s2 }
  0x20   :  { %p94_p1 = pnand %p92_p0, %p89_p13 }
  0x22   :  { %97 = shalt.err (!%p94_p1)
}
  0x23   :  { %44 = dma.vmem_to_hbm [thread:$0]  %s39_s24, 64, %s156_s2, [#allocation4], %s103_s19, %s103_s19, %s104_s20  }
  0x24   :  { %100 = dma.done.wait [#allocation4], 64  }
  0x25   :  { %101 = vsyncadd [#allocation4], 4294967232 }
  0x26   :  { %48 = vsyncpa [#allocation3], 1 }
  0x27   :  { %49 = vsyncpa [#allocation4], 1 }

</bundles_post_ra>
